<compile_context>
chip_gen: v5e
topology: v5e:2x2
jax: 0.10.0
libtpu: 0.0.40
codegen_flags: <defaults>
</compile_context>

<pallas_src>
import functools

import jax
import jax.numpy as jnp
from jax import lax
from jax.experimental import pallas as pl
from jax.experimental.pallas import tpu as pltpu

_LANE = 128  # lane width; padded label / K axes


def _mlp_kernel(x_ref,                           # VMEM (tile_b, 5) int32 token ids
                m_ref, b1_ref, w2_ref, b2_ref,   # VMEM resident params
                o_ref,                           # VMEM out (tile_b, 128) bf16
                *, vocab):
    tile_b, n_pos = x_ref.shape
    k_pad = m_ref.shape[0]

    ids = x_ref[...]                                             # (tile_b, 5) int32

    # ---- one-hot over the fused (position, vocab) axis: col p*V + id ----
    col = lax.broadcasted_iota(jnp.int32, (tile_b, k_pad), 1)
    onehot = jnp.zeros((tile_b, k_pad), jnp.float32)
    for p in range(n_pos):                                       # static unroll (5)
        onehot += (col == (ids[:, p:p + 1] + p * vocab)).astype(jnp.float32)

    # ---- fused embedding-gather + linear1 (+ bias, tanh) on the MXU ----
    # dropout(p=0.5) is identity at inference.
    # TODO(synk): training-mode dropout would need pltpu.prng_random_bits.
    h = jnp.tanh(
        jnp.dot(onehot.astype(jnp.bfloat16), m_ref[...],
                preferred_element_type=jnp.float32) + b1_ref[...])

    # ---- linear2 (padded label lanes carry -1e30 bias -> zero softmax mass) ----
    logits = jnp.dot(h.astype(jnp.bfloat16), w2_ref[...],
                     preferred_element_type=jnp.float32) + b2_ref[...]

    # ---- numerically stable softmax over the label axis (f32 math) ----
    mx = jnp.max(logits, axis=-1, keepdims=True)
    e = jnp.exp(logits - mx)
    denom = jnp.sum(e, axis=-1, keepdims=True)
    o_ref[...] = (e * pl.reciprocal(denom, approx=True)).astype(o_ref.dtype)


@functools.partial(jax.jit, static_argnames=("tile_b",))
def simple_mlp_forward(x_idx, emb_table, w1, b1, w2, b2, *, tile_b=None):
    """x_idx: (B, 5) int token ids. Returns (B, num_labels) softmax probs (f32)."""
    B, n_pos = x_idx.shape
    V, E = emb_table.shape
    in1, H = w1.shape
    L = w2.shape[1]
    assert in1 == n_pos * E

    # Batch tile: large (amortize per-grid-step overhead) but capped at
    # ceil(B/2) so v7x's two TensorCores both get grid steps; multiple of 16
    # for the bf16 output tiling.  Footprint stays well under VMEM limits.
    if tile_b is None:
        half = (B + 1) // 2
        tile_b = min(512, ((half + 15) // 16) * 16)
    tile_b = max(16, (tile_b // 16) * 16)

    # ---- parameter prep (fused by jit; done once per call) ----
    # Fold embedding into linear1:  M[p*V + v, :] = emb[v] @ W1_p
    w1_r = w1.reshape(n_pos, E, H).astype(jnp.float32)
    m = jnp.einsum("ve,peh->pvh", emb_table.astype(jnp.float32), w1_r)
    m = m.reshape(n_pos * V, H)
    k_pad = pl.cdiv(n_pos * V, _LANE) * _LANE
    m_pad = jnp.zeros((k_pad, H), jnp.bfloat16).at[:n_pos * V, :].set(
        m.astype(jnp.bfloat16))
    b1_2d = b1.reshape(1, H).astype(jnp.float32)
    w2_pad = jnp.zeros((H, _LANE), jnp.bfloat16).at[:, :L].set(w2.astype(jnp.bfloat16))
    b2_pad = jnp.full((1, _LANE), -1e30, jnp.float32).at[0, :L].set(
        b2.astype(jnp.float32))

    b_pad = pl.cdiv(B, tile_b) * tile_b
    x_pad = jnp.zeros((b_pad, n_pos), jnp.int32).at[:B].set(x_idx.astype(jnp.int32))
    grid = (b_pad // tile_b,)

    def _resident(shape):                     # whole array, stays resident in VMEM
        return pl.BlockSpec(shape, lambda i: (0,) * len(shape))

    out_full = pl.pallas_call(
        functools.partial(_mlp_kernel, vocab=V),
        out_shape=jax.ShapeDtypeStruct((b_pad, _LANE), jnp.bfloat16),
        grid_spec=pltpu.PrefetchScalarGridSpec(
            num_scalar_prefetch=0,
            grid=grid,
            in_specs=[
                pl.BlockSpec((tile_b, n_pos), lambda i: (i, 0)),  # token-id tile
                _resident((k_pad, H)),        # fused emb @ W1 block matrix (bf16)
                _resident((1, H)),            # linear1 bias (f32)
                _resident((H, _LANE)),        # linear2 weight (lane-padded, bf16)
                _resident((1, _LANE)),        # linear2 bias   (lane-padded, -1e30)
            ],
            out_specs=pl.BlockSpec((tile_b, _LANE), lambda i: (i, 0)),
        ),
        compiler_params=pltpu.CompilerParams(
            dimension_semantics=("parallel",),   # batch axis -> both TCs on v7x
        ),
    )(x_pad, m_pad, b1_2d, w2_pad, b2_pad)

    return out_full[:B, :L].astype(jnp.float32)


def _init_params(key, vocab_size, embedding_dim, hidden_dim, num_labels):
    k0, k1, k2, k3, k4 = jax.random.split(key, 5)
    in1 = embedding_dim * 5
    emb = jax.random.normal(k0, (vocab_size, embedding_dim), jnp.float32)
    # Linear params stored as (in_features, out_features) = torch weight.T
    lim1 = 1.0 / jnp.sqrt(in1)
    w1 = jax.random.uniform(k1, (in1, hidden_dim), jnp.float32, -lim1, lim1)
    b1 = jax.random.uniform(k2, (hidden_dim,), jnp.float32, -lim1, lim1)
    lim2 = 1.0 / jnp.sqrt(hidden_dim)
    w2 = jax.random.uniform(k3, (hidden_dim, num_labels), jnp.float32, -lim2, lim2)
    b2 = jax.random.uniform(k4, (num_labels,), jnp.float32, -lim2, lim2)
    return emb, w1, b1, w2, b2


if __name__ == "__main__":
    batch_size = 8
    vocab_size = 100
    embedding_dim = 16
    hidden_dim = 32
    num_labels = 6

    key = jax.random.PRNGKey(0)
    kp, kx = jax.random.split(key)
    emb, w1, b1, w2, b2 = _init_params(
        kp, vocab_size, embedding_dim, hidden_dim, num_labels
    )
    x = jax.random.randint(kx, (batch_size, 5), 0, vocab_size, dtype=jnp.int32)

    out = simple_mlp_forward(x, emb, w1, b1, w2, b2)
    out = jax.block_until_ready(out)

    assert out.shape == (batch_size, num_labels)
    # softmax rows sum to 1 (loose tol: bf16 matmuls/output + approx reciprocal)
    assert jnp.allclose(jnp.sum(out, axis=1), 1.0, atol=2e-2)
    # compare against a pure-JAX reference of the PyTorch forward (eval mode)
    ref_h = jnp.tanh(emb[x].reshape(batch_size, -1) @ w1 + b1)
    ref = jax.nn.softmax(ref_h @ w2 + b2, axis=1)
    assert jnp.allclose(out, ref, atol=2e-2)
    print("KERNEL_OK")
</pallas_src>

<mosaic_0001>
module attributes {stable_mosaic.version = 11 : i64} {
  func.func @_mlp_kernel(%arg0: i32, %arg1: memref<16x5xi32, #tpu.memory_space<vmem>>, %arg2: memref<512x32xbf16, #tpu.memory_space<vmem>>, %arg3: memref<1x32xf32, #tpu.memory_space<vmem>>, %arg4: memref<32x128xbf16, #tpu.memory_space<vmem>>, %arg5: memref<1x128xf32, #tpu.memory_space<vmem>>, %arg6: memref<16x128xbf16, #tpu.memory_space<vmem>>) attributes {dimension_semantics = [#tpu.dimension_semantics<parallel>], iteration_bounds = array<i64: 1>, scalar_prefetch = 0 : i64, scratch_operands = 0 : i64, tpu.core_type = #tpu.core_type<tc>, window_params = [{transform_indices = @transform_0, window_bounds = array<i64: 16, 5>}, {pipeline_mode = #tpu.pipeline_mode<synchronous>, transform_indices = @transform_1, window_bounds = array<i64: 512, 32>}, {pipeline_mode = #tpu.pipeline_mode<synchronous>, transform_indices = @transform_2, window_bounds = array<i64: 1, 32>}, {pipeline_mode = #tpu.pipeline_mode<synchronous>, transform_indices = @transform_3, window_bounds = array<i64: 32, 128>}, {pipeline_mode = #tpu.pipeline_mode<synchronous>, transform_indices = @transform_4, window_bounds = array<i64: 1, 128>}, {transform_indices = @transform_5, window_bounds = array<i64: 16, 128>}]} {
    %c0 = arith.constant 0 : index
    %c0_0 = arith.constant 0 : index
    %0 = vector.load %arg1[%c0, %c0_0] : memref<16x5xi32, #tpu.memory_space<vmem>>, vector<16x5xi32>
    %1 = tpu.iota {dimensions = array<i32: 1>} : vector<16x512xi32>
    %cst = arith.constant 0.000000e+00 : f32
    %2 = vector.broadcast %cst : f32 to vector<16x512xf32>
    %3 = vector.extract_strided_slice %0 {offsets = [0, 0], sizes = [16, 1], strides = [1, 1]} : vector<16x5xi32> to vector<16x1xi32>
    %c0_i32 = arith.constant 0 : i32
    %4 = vector.broadcast %c0_i32 : i32 to vector<16x1xi32>
    %5 = arith.addi %3, %4 : vector<16x1xi32>
    %6 = vector.broadcast %5 : vector<16x1xi32> to vector<16x512xi32>
    %7 = arith.cmpi eq, %1, %6 : vector<16x512xi32>
    %8 = arith.extui %7 : vector<16x512xi1> to vector<16x512xi32>
    %9 = arith.sitofp %8 : vector<16x512xi32> to vector<16x512xf32>
    %10 = arith.addf %2, %9 : vector<16x512xf32>
    %11 = vector.extract_strided_slice %0 {offsets = [0, 1], sizes = [16, 1], strides = [1, 1]} : vector<16x5xi32> to vector<16x1xi32>
    %c100_i32 = arith.constant 100 : i32
    %12 = vector.broadcast %c100_i32 : i32 to vector<16x1xi32>
    %13 = arith.addi %11, %12 : vector<16x1xi32>
    %14 = vector.broadcast %13 : vector<16x1xi32> to vector<16x512xi32>
    %15 = arith.cmpi eq, %1, %14 : vector<16x512xi32>
    %16 = arith.extui %15 : vector<16x512xi1> to vector<16x512xi32>
    %17 = arith.sitofp %16 : vector<16x512xi32> to vector<16x512xf32>
    %18 = arith.addf %10, %17 : vector<16x512xf32>
    %19 = vector.extract_strided_slice %0 {offsets = [0, 2], sizes = [16, 1], strides = [1, 1]} : vector<16x5xi32> to vector<16x1xi32>
    %c200_i32 = arith.constant 200 : i32
    %20 = vector.broadcast %c200_i32 : i32 to vector<16x1xi32>
    %21 = arith.addi %19, %20 : vector<16x1xi32>
    %22 = vector.broadcast %21 : vector<16x1xi32> to vector<16x512xi32>
    %23 = arith.cmpi eq, %1, %22 : vector<16x512xi32>
    %24 = arith.extui %23 : vector<16x512xi1> to vector<16x512xi32>
    %25 = arith.sitofp %24 : vector<16x512xi32> to vector<16x512xf32>
    %26 = arith.addf %18, %25 : vector<16x512xf32>
    %27 = vector.extract_strided_slice %0 {offsets = [0, 3], sizes = [16, 1], strides = [1, 1]} : vector<16x5xi32> to vector<16x1xi32>
    %c300_i32 = arith.constant 300 : i32
    %28 = vector.broadcast %c300_i32 : i32 to vector<16x1xi32>
    %29 = arith.addi %27, %28 : vector<16x1xi32>
    %30 = vector.broadcast %29 : vector<16x1xi32> to vector<16x512xi32>
    %31 = arith.cmpi eq, %1, %30 : vector<16x512xi32>
    %32 = arith.extui %31 : vector<16x512xi1> to vector<16x512xi32>
    %33 = arith.sitofp %32 : vector<16x512xi32> to vector<16x512xf32>
    %34 = arith.addf %26, %33 : vector<16x512xf32>
    %35 = vector.extract_strided_slice %0 {offsets = [0, 4], sizes = [16, 1], strides = [1, 1]} : vector<16x5xi32> to vector<16x1xi32>
    %c400_i32 = arith.constant 400 : i32
    %36 = vector.broadcast %c400_i32 : i32 to vector<16x1xi32>
    %37 = arith.addi %35, %36 : vector<16x1xi32>
    %38 = vector.broadcast %37 : vector<16x1xi32> to vector<16x512xi32>
    %39 = arith.cmpi eq, %1, %38 : vector<16x512xi32>
    %40 = arith.extui %39 : vector<16x512xi1> to vector<16x512xi32>
    %41 = arith.sitofp %40 : vector<16x512xi32> to vector<16x512xf32>
    %42 = arith.addf %34, %41 : vector<16x512xf32>
    %43 = arith.truncf %42 : vector<16x512xf32> to vector<16x512xbf16>
    %c0_1 = arith.constant 0 : index
    %c0_2 = arith.constant 0 : index
    %44 = vector.load %arg2[%c0_1, %c0_2] : memref<512x32xbf16, #tpu.memory_space<vmem>>, vector<512x32xbf16>
    %cst_3 = arith.constant dense<0.000000e+00> : vector<16x32xf32>
    %45 = tpu.matmul %43, %44, %cst_3 {dimension_numbers = #tpu.dot_dimension_numbers<[1], [0], [0], [1], [0, 0, 1, 1], [], []>} : vector<16x512xbf16>, vector<512x32xbf16>, vector<16x32xf32> -> vector<16x32xf32>
    %c0_4 = arith.constant 0 : index
    %c0_5 = arith.constant 0 : index
    %46 = vector.load %arg3[%c0_4, %c0_5] : memref<1x32xf32, #tpu.memory_space<vmem>>, vector<1x32xf32>
    %47 = vector.broadcast %46 : vector<1x32xf32> to vector<16x32xf32>
    %48 = arith.addf %45, %47 : vector<16x32xf32>
    %49 = math.tanh %48 : vector<16x32xf32>
    %50 = arith.truncf %49 : vector<16x32xf32> to vector<16x32xbf16>
    %c0_6 = arith.constant 0 : index
    %c0_7 = arith.constant 0 : index
    %51 = vector.load %arg4[%c0_6, %c0_7] : memref<32x128xbf16, #tpu.memory_space<vmem>>, vector<32x128xbf16>
    %cst_8 = arith.constant dense<0.000000e+00> : vector<16x128xf32>
    %52 = tpu.matmul %50, %51, %cst_8 {dimension_numbers = #tpu.dot_dimension_numbers<[1], [0], [0], [1], [0, 0, 1, 1], [], []>} : vector<16x32xbf16>, vector<32x128xbf16>, vector<16x128xf32> -> vector<16x128xf32>
    %c0_9 = arith.constant 0 : index
    %c0_10 = arith.constant 0 : index
    %53 = vector.load %arg5[%c0_9, %c0_10] : memref<1x128xf32, #tpu.memory_space<vmem>>, vector<1x128xf32>
    %54 = vector.broadcast %53 : vector<1x128xf32> to vector<16x128xf32>
    %55 = arith.addf %52, %54 : vector<16x128xf32>
    %cst_11 = arith.constant dense<0xFF800000> : vector<16xf32>
    %56 = vector.multi_reduction <maximumf>, %55, %cst_11 [1] : vector<16x128xf32> to vector<16xf32>
    %57 = vector.shape_cast %56 : vector<16xf32> to vector<16x1xf32>
    %58 = vector.broadcast %57 : vector<16x1xf32> to vector<16x128xf32>
    %59 = arith.subf %55, %58 : vector<16x128xf32>
    %60 = math.exp %59 : vector<16x128xf32>
    %cst_12 = arith.constant dense<0.000000e+00> : vector<16xf32>
    %61 = vector.multi_reduction <add>, %60, %cst_12 [1] : vector<16x128xf32> to vector<16xf32>
    %62 = vector.shape_cast %61 : vector<16xf32> to vector<16x1xf32>
    %63 = tpu.reciprocal %62 {approx = true} : vector<16x1xf32> -> vector<16x1xf32>
    %64 = vector.broadcast %63 : vector<16x1xf32> to vector<16x128xf32>
    %65 = arith.mulf %60, %64 : vector<16x128xf32>
    %66 = arith.truncf %65 : vector<16x128xf32> to vector<16x128xbf16>
    %c0_13 = arith.constant 0 : index
    %c0_14 = arith.constant 0 : index
    %67 = vector.load %arg6[%c0_13, %c0_14] : memref<16x128xbf16, #tpu.memory_space<vmem>>, vector<16x128xbf16>
    tpu.vector_store %arg6[%c0_13, %c0_14], %66 {strides = array<i32>} : memref<16x128xbf16, #tpu.memory_space<vmem>>, vector<16x128xbf16>,
    return
  }
  func.func @transform_0(%arg0: i32) -> (i32, i32) {
    %c0_i32 = arith.constant 0 : i32
    %c0_i32_0 = arith.constant 0 : i32
    return %arg0, %c0_i32 : i32, i32
  }
  func.func @transform_1(%arg0: i32) -> (i32, i32) {
    %c0_i32 = arith.constant 0 : i32
    %c0_i32_0 = arith.constant 0 : i32
    %c0_i32_1 = arith.constant 0 : i32
    return %c0_i32, %c0_i32_0 : i32, i32
  }
  func.func @transform_2(%arg0: i32) -> (i32, i32) {
    %c0_i32 = arith.constant 0 : i32
    %c0_i32_0 = arith.constant 0 : i32
    %c0_i32_1 = arith.constant 0 : i32
    return %c0_i32, %c0_i32_0 : i32, i32
  }
  func.func @transform_3(%arg0: i32) -> (i32, i32) {
    %c0_i32 = arith.constant 0 : i32
    %c0_i32_0 = arith.constant 0 : i32
    %c0_i32_1 = arith.constant 0 : i32
    return %c0_i32, %c0_i32_0 : i32, i32
  }
  func.func @transform_4(%arg0: i32) -> (i32, i32) {
    %c0_i32 = arith.constant 0 : i32
    %c0_i32_0 = arith.constant 0 : i32
    %c0_i32_1 = arith.constant 0 : i32
    return %c0_i32, %c0_i32_0 : i32, i32
  }
  func.func @transform_5(%arg0: i32) -> (i32, i32) {
    %c0_i32 = arith.constant 0 : i32
    %c0_i32_0 = arith.constant 0 : i32
    return %arg0, %c0_i32 : i32, i32
  }
}

</mosaic_0001>

<bundles_post_ra>
// kernel: simple_mlp_forward.1
= control target key start
LH: loop header
LB: loop body
LE: loop exit
PB: predicated region body
PF: predicated region fallthrough
CT: control target
= control target key end

     0   :  { %v857_v0 = vmov 0   ;;  %v858_v2 = vmov 1   ;;  %v859_v4 = vmov 2   ;;  %v860_v11 = vmov 3   ;;  %s1125_s0 = inlined_call_operand.vmem [shape: s32[16,5], index: 0, kind: input, shape index: {}]   ;;  %s1126_s2 = inlined_call_operand.vmem [shape: f32[1,32], index: 2, kind: input, shape index: {}]   ;;  %s1127_s1 = inlined_call_operand.vmem [shape: bf16[512,32], index: 1, kind: input, shape index: {}]   ;;  %s1128_s4 = inlined_call_operand.vmem [shape: f32[1,128], index: 4, kind: input, shape index: {}]   ;;  %s1129_s3 = inlined_call_operand.vmem [shape: bf16[32,128], index: 3, kind: input, shape index: {}]   ;;  %s1130_s5 = inlined_call_operand.vmem [shape: bf16[16,128], index: 5, kind: output, shape index: {}]  }
   0x1   :  { %835 = vset.pattern.permute.xlu0 %v857_v0  ;;  %v21_v1 = vld [vmem:[%s1125_s0] sm:$0xff]  ;;  %836 = vset.pattern.permute.xlu1 %v858_v2  ;;  %v22_v6 = vld [vmem:[%s1125_s0 + $0x8] sm:$0xff]  ;;  %v861_v13 = vmov 4   ;;  %v797_v15 = vld [vmem:[%s1127_s1 + $0x38] sm:$0xff]  ;;  %v23_v40 = vlaneseq  ;;  %v862_v56 = vmov 0.0  }
   0x2   :  { %29 = vperm.xlu0 %835, %v21_v1   ;;  %v66_v3 = vadd.s32 100, %v21_v1  ;;  %837 = vset.pattern.permute.xlu2 %v859_v4  ;;  %v106_v5 = vadd.s32 200, %v21_v1  ;;  %v67_v7 = vadd.s32 100, %v22_v6  ;;  %v107_v8 = vadd.s32 200, %v22_v6  ;;  %v805_v16 = vld [vmem:[%s1127_s1 + $0x78] sm:$0xff]  ;;  %v796_v19 = vld [vmem:[%s1127_s1 + $0x30] sm:$0xff] }
   0x3   :  { %v146_v9 = vadd.s32 300, %v21_v1  ;;  %v147_v10 = vadd.s32 300, %v22_v6  ;;  %v186_v12 = vadd.s32 400, %v21_v1  ;;  %v187_v14 = vadd.s32 400, %v22_v6  ;;  %v813_v17 = vld [vmem:[%s1127_s1 + $0xb8] sm:$0xff]  ;;  %490 = vmatpush.bf16.msra.mxu0 %v797_v15  ;;  %504 = vmatpush.bf16.msra.mxu1 %v805_v16  ;;  %v804_v20 = vld [vmem:[%s1127_s1 + $0x70] sm:$0xff] }
   0x4   :  { %69 = vperm.xlu1 %836, %v66_v3   ;;  %109 = vperm.xlu2 %837, %v106_v5   ;;  %v821_v18 = vld [vmem:[%s1127_s1 + $0xf8] sm:$0xff]  ;;  %v812_v21 = vld [vmem:[%s1127_s1 + $0xb0] sm:$0xff]  ;;  %v795_v23 = vld [vmem:[%s1127_s1 + $0x28] sm:$0xff]  ;;  %v985_v45 = vand.u32 127, %v23_v40 }
   0x5   :  { %518 = vmatpush.bf16.msra.mxu2 %v813_v17  ;;  %532 = vmatpush.bf16.msra.mxu3 %v821_v18  ;;  %v820_v22 = vld [vmem:[%s1127_s1 + $0xf0] sm:$0xff]  ;;  %v803_v24 = vld [vmem:[%s1127_s1 + $0x68] sm:$0xff]  ;;  %v794_v27 = vld [vmem:[%s1127_s1 + $0x20] sm:$0xff] }
   0x6   :  { %v811_v25 = vld [vmem:[%s1127_s1 + $0xa8] sm:$0xff]  ;;  %v802_v28 = vld [vmem:[%s1127_s1 + $0x60] sm:$0xff]  ;;  %v793_v31 = vld [vmem:[%s1127_s1 + $0x18] sm:$0xff]  ;;  %v1000_v51 = vadd.s32 128, %v985_v45  ;;  %v1003_v52 = vadd.s32 256, %v985_v45  ;;  %v1006_v53 = vadd.s32 384, %v985_v45 }
   0x7   :  { %491 = vmatpush.bf16.msra.mxu0 %v796_v19  ;;  %505 = vmatpush.bf16.msra.mxu1 %v804_v20  ;;  %v819_v26 = vld [vmem:[%s1127_s1 + $0xe8] sm:$0xff]  ;;  %v810_v29 = vld [vmem:[%s1127_s1 + $0xa0] sm:$0xff]  ;;  %v801_v32 = vld [vmem:[%s1127_s1 + $0x58] sm:$0xff] }
   0x8   :  { %v818_v30 = vld [vmem:[%s1127_s1 + $0xe0] sm:$0xff]  ;;  %v809_v33 = vld [vmem:[%s1127_s1 + $0x98] sm:$0xff]  ;;  %v792_v36 = vld [vmem:[%s1127_s1 + $0x10] sm:$0xff] }
   0x9   :  { %519 = vmatpush.bf16.msra.mxu2 %v812_v21  ;;  %533 = vmatpush.bf16.msra.mxu3 %v820_v22  ;;  %v817_v35 = vld [vmem:[%s1127_s1 + $0xd8] sm:$0xff]  ;;  %v800_v37 = vld [vmem:[%s1127_s1 + $0x50] sm:$0xff]  ;;  %v791_v41 = vld [vmem:[%s1127_s1 + $0x8] sm:$0xff] }
   0xa   :  { %32 = vperm.xlu0 %835, %v22_v6   ;;  %v808_v38 = vld [vmem:[%s1127_s1 + $0x90] sm:$0xff]  ;;  %v799_v42 = vld [vmem:[%s1127_s1 + $0x48] sm:$0xff]  ;;  %v790_v46 = vld [vmem:[%s1127_s1] sm:$0xff] }
   0xb   :  { %492 = vmatpush.bf16.msra.mxu0 %v795_v23  ;;  %506 = vmatpush.bf16.msra.mxu1 %v803_v24  ;;  %v816_v39 = vld [vmem:[%s1127_s1 + $0xd0] sm:$0xff]  ;;  %v807_v43 = vld [vmem:[%s1127_s1 + $0x88] sm:$0xff]  ;;  %v798_v48 = vld [vmem:[%s1127_s1 + $0x40] sm:$0xff] }
   0xc   :  { %72 = vperm.xlu1 %836, %v67_v7   ;;  %112 = vperm.xlu2 %837, %v107_v8   ;;  %v815_v44 = vld [vmem:[%s1127_s1 + $0xc8] sm:$0xff]  ;;  %v806_v49 = vld [vmem:[%s1127_s1 + $0x80] sm:$0xff] }
   0xd   :  { %520 = vmatpush.bf16.msra.mxu2 %v811_v25  ;;  %534 = vmatpush.bf16.msra.mxu3 %v819_v26  ;;  %v814_v50 = vld [vmem:[%s1127_s1 + $0xc0] sm:$0xff] }
   0xf   :  { %493 = vmatpush.bf16.msra.mxu0 %v794_v27  ;;  %507 = vmatpush.bf16.msra.mxu1 %v802_v28 }
  0x11   :  { %521 = vmatpush.bf16.msra.mxu2 %v810_v29  ;;  %535 = vmatpush.bf16.msra.mxu3 %v818_v30 }
  0x12   :  { %838 = vset.pattern.permute.xlu0 %v860_v11 }
  0x13   :  { %149 = vperm.xlu0 %838, %v146_v9   ;;  %494 = vmatpush.bf16.msra.mxu0 %v793_v31 }
  0x14   :  { %839 = vset.pattern.permute.xlu1 %v860_v11  ;;  %840 = vset.pattern.permute.xlu2 %v861_v13 }
  0x15   :  { %152 = vperm.xlu1 %839, %v147_v10   ;;  %189 = vperm.xlu2 %840, %v186_v12  }
  0x16   :  { %508 = vmatpush.bf16.msra.mxu1 %v801_v32  ;;  %522 = vmatpush.bf16.msra.mxu2 %v809_v33 }
  0x17   :  { %536 = vmatpush.bf16.msra.mxu3 %v817_v35  ;;  %495 = vmatpush.bf16.msra.mxu0 %v792_v36 }
  0x1a   :  { %509 = vmatpush.bf16.msra.mxu1 %v800_v37  ;;  %523 = vmatpush.bf16.msra.mxu2 %v808_v38 }
  0x1b   :  { %842 = vset.pattern.permute.xlu0 %v861_v13  ;;  %537 = vmatpush.bf16.msra.mxu3 %v816_v39 }
  0x1c   :  { %496 = vmatpush.bf16.msra.mxu0 %v791_v41 }
  0x1d   :  { %841 = vset.pattern.permute.xlu1 %v861_v13 }
  0x1e   :  { %192 = vperm.xlu1 %841, %v187_v14   ;;  %510 = vmatpush.bf16.msra.mxu1 %v799_v42 }
  0x1f   :  { %524 = vmatpush.bf16.msra.mxu2 %v807_v43  ;;  %538 = vmatpush.bf16.msra.mxu3 %v815_v44 }
  0x20   :  { %497 = vmatpush.bf16.msra.mxu0 %v790_v46 }
  0x22   :  { %511 = vmatpush.bf16.msra.mxu1 %v798_v48 }
  0x23   :  { %525 = vmatpush.bf16.msra.mxu2 %v806_v49  ;;  %539 = vmatpush.bf16.msra.mxu3 %v814_v50 }
  0x5e   :  { %v956_v34 = vpop.permute.xlu2 %109 }
  0x5f   :  { %vm114_vm0 = vcmp.eq.s32.totalorder %v985_v45, %v956_v34  ;;  %vm115_vm1 = vcmp.eq.s32.totalorder %v1000_v51, %v956_v34  ;;  %vm116_vm10 = vcmp.eq.s32.totalorder %v1003_v52, %v956_v34  ;;  %vm117_vm11 = vcmp.eq.s32.totalorder %v1006_v53, %v956_v34 }
  0x60   :  { %v629_v57 = vsel %vm114_vm0, 1.0, %v862_v56  ;;  %v630_v58 = vsel %vm115_vm1, 1.0, %v862_v56  ;;  %v631_v5 = vsel %vm116_vm10, 1.0, %v862_v56  ;;  %v632_v6 = vsel %vm117_vm11, 1.0, %v862_v56 }
  0x66   :  { %v113_v47 = vpop.permute.xlu2 %112 }
  0x67   :  { %vm118_vm12 = vcmp.eq.s32.totalorder %v985_v45, %v113_v47  ;;  %vm119_vm13 = vcmp.eq.s32.totalorder %v1000_v51, %v113_v47  ;;  %vm120_vm14 = vcmp.eq.s32.totalorder %v1003_v52, %v113_v47  ;;  %vm121_vm15 = vcmp.eq.s32.totalorder %v1006_v53, %v113_v47 }
  0x68   :  { %v633_v12 = vsel %vm118_vm12, 1.0, %v862_v56  ;;  %v634_v13 = vsel %vm119_vm13, 1.0, %v862_v56  ;;  %v635_v14 = vsel %vm120_vm14, 1.0, %v862_v56  ;;  %v636_v15 = vsel %vm121_vm15, 1.0, %v862_v56 }
  0x6f   :  { %v1030_v63 = vpop.permute.xlu2 %189 }
  0x70   :  { %vm194_vm0 = vcmp.eq.s32.totalorder %v985_v45, %v1030_v63  ;;  %vm195_vm1 = vcmp.eq.s32.totalorder %v1000_v51, %v1030_v63 }
  0x71   :  { %v645_v16 = vsel %vm194_vm0, 1.0, %v862_v56  ;;  %v646_v17 = vsel %vm195_vm1, 1.0, %v862_v56 }
  0x74   :  { %v30_v54 = vpop.permute.xlu0 %29 }
  0x75   :  { %vm34_vm2 = vcmp.eq.s32.totalorder %v985_v45, %v30_v54  ;;  %vm35_vm3 = vcmp.eq.s32.totalorder %v1000_v51, %v30_v54  ;;  %vm36_vm4 = vcmp.eq.s32.totalorder %v1003_v52, %v30_v54  ;;  %vm37_vm5 = vcmp.eq.s32.totalorder %v1006_v53, %v30_v54 }
  0x76   :  { %v70_v55 = vpop.permute.xlu1 %69  ;;  %v613_v59 = vsel %vm34_vm2, 1.0, %v862_v56  ;;  %v614_v60 = vsel %vm35_vm3, 1.0, %v862_v56  ;;  %v615_v61 = vsel %vm36_vm4, 1.0, %v862_v56  ;;  %v616_v62 = vsel %vm37_vm5, 1.0, %v862_v56 }
  0x77   :  { %vm74_vm6 = vcmp.eq.s32.totalorder %v985_v45, %v70_v55  ;;  %vm75_vm7 = vcmp.eq.s32.totalorder %v1000_v51, %v70_v55  ;;  %vm76_vm8 = vcmp.eq.s32.totalorder %v1003_v52, %v70_v55  ;;  %vm77_vm9 = vcmp.eq.s32.totalorder %v1006_v53, %v70_v55 }
  0x78   :  { %v621_v0 = vsel %vm74_vm6, 1.0, %v862_v56  ;;  %v622_v1 = vsel %vm75_vm7, 1.0, %v862_v56  ;;  %v623_v2 = vsel %vm76_vm8, 1.0, %v862_v56  ;;  %v624_v3 = vsel %vm77_vm9, 1.0, %v862_v56 }
  0x79   :  { %v98_v8 = vadd.f32 %v621_v0, %v613_v59  ;;  %v99_v9 = vadd.f32 %v622_v1, %v614_v60  ;;  %v100_v10 = vadd.f32 %v623_v2, %v615_v61  ;;  %v101_v11 = vadd.f32 %v624_v3, %v616_v62 }
  0x7a   :  { %vm196_vm2 = vcmp.eq.s32.totalorder %v1003_v52, %v1030_v63  ;;  %vm197_vm3 = vcmp.eq.s32.totalorder %v1006_v53, %v1030_v63 }
  0x7b   :  { %v138_v18 = vadd.f32 %v629_v57, %v98_v8  ;;  %v139_v19 = vadd.f32 %v630_v58, %v99_v9  ;;  %v140_v20 = vadd.f32 %v631_v5, %v100_v10  ;;  %v141_v21 = vadd.f32 %v632_v6, %v101_v11 }
  0x7c   :  { %v33_v4 = vpop.permute.xlu0 %32  ;;  %v647_v42 = vsel %vm196_vm2, 1.0, %v862_v56  ;;  %v648_v43 = vsel %vm197_vm3, 1.0, %v862_v56 }
  0x7d   :  { %vm38_vm4 = vcmp.eq.s32.totalorder %v985_v45, %v33_v4  ;;  %vm39_vm5 = vcmp.eq.s32.totalorder %v1000_v51, %v33_v4  ;;  %vm40_vm8 = vcmp.eq.s32.totalorder %v1003_v52, %v33_v4  ;;  %vm41_vm9 = vcmp.eq.s32.totalorder %v1006_v53, %v33_v4 }
  0x7e   :  { %v73_v7 = vpop.permute.xlu1 %72  ;;  %v617_v22 = vsel %vm38_vm4, 1.0, %v862_v56  ;;  %v618_v23 = vsel %vm39_vm5, 1.0, %v862_v56  ;;  %v619_v27 = vsel %vm40_vm8, 1.0, %v862_v56  ;;  %v620_v28 = vsel %vm41_vm9, 1.0, %v862_v56 }
  0x7f   :  { %vm78_vm6 = vcmp.eq.s32.totalorder %v985_v45, %v73_v7  ;;  %vm79_vm7 = vcmp.eq.s32.totalorder %v1000_v51, %v73_v7  ;;  %vm80_vm10 = vcmp.eq.s32.totalorder %v1003_v52, %v73_v7  ;;  %vm81_vm11 = vcmp.eq.s32.totalorder %v1006_v53, %v73_v7 }
  0x80   :  { %v625_v24 = vsel %vm78_vm6, 1.0, %v862_v56  ;;  %v626_v25 = vsel %vm79_vm7, 1.0, %v862_v56  ;;  %v627_v29 = vsel %vm80_vm10, 1.0, %v862_v56  ;;  %v628_v30 = vsel %vm81_vm11, 1.0, %v862_v56 }
  0x81   :  { %v102_v32 = vadd.f32 %v625_v24, %v617_v22  ;;  %v103_v33 = vadd.f32 %v626_v25, %v618_v23  ;;  %v104_v38 = vadd.f32 %v627_v29, %v619_v27  ;;  %v105_v39 = vadd.f32 %v628_v30, %v620_v28 }
  0x82   :  { %vm569_vm8 = vcmask 261120  }
  0x83   :  { %v142_v49 = vadd.f32 %v633_v12, %v102_v32  ;;  %v143_v50 = vadd.f32 %v634_v13, %v103_v33  ;;  %v144_v57 = vadd.f32 %v635_v14, %v104_v38  ;;  %v145_v58 = vadd.f32 %v636_v15, %v105_v39  ;;  %v843_v14 = vld [vmem:[%s1126_s2] ss:$0 sm:$0xff] }
  0x84   :  { %v844_v33 = vld [vmem:[%s1128_s4] ss:$0 sm:$0xff] }
  0x85   :  { %v150_v26 = vpop.permute.xlu0 %149 }
  0x86   :  { %vm154_vm12 = vcmp.eq.s32.totalorder %v985_v45, %v150_v26  ;;  %vm155_vm13 = vcmp.eq.s32.totalorder %v1000_v51, %v150_v26  ;;  %vm156_vm14 = vcmp.eq.s32.totalorder %v1003_v52, %v150_v26  ;;  %vm157_vm15 = vcmp.eq.s32.totalorder %v1006_v53, %v150_v26 }
  0x87   :  { %v153_v31 = vpop.permute.xlu1 %152  ;;  %v637_v34 = vsel %vm154_vm12, 1.0, %v862_v56  ;;  %v638_v35 = vsel %vm155_vm13, 1.0, %v862_v56  ;;  %v639_v36 = vsel %vm156_vm14, 1.0, %v862_v56  ;;  %v640_v37 = vsel %vm157_vm15, 1.0, %v862_v56 }
  0x88   :  { %vm158_vm0 = vcmp.eq.s32.totalorder %v985_v45, %v153_v31  ;;  %vm159_vm1 = vcmp.eq.s32.totalorder %v1000_v51, %v153_v31  ;;  %vm160_vm4 = vcmp.eq.s32.totalorder %v1003_v52, %v153_v31  ;;  %vm161_vm5 = vcmp.eq.s32.totalorder %v1006_v53, %v153_v31 }
  0x89   :  { %v178_v40 = vadd.f32 %v637_v34, %v138_v18  ;;  %v179_v41 = vadd.f32 %v638_v35, %v139_v19  ;;  %v641_v44 = vsel %vm158_vm0, 1.0, %v862_v56  ;;  %v642_v46 = vsel %vm159_vm1, 1.0, %v862_v56 }
  0x8a   :  { %v180_v47 = vadd.f32 %v639_v36, %v140_v20  ;;  %v181_v48 = vadd.f32 %v640_v37, %v141_v21  ;;  %v643_v54 = vsel %vm160_vm4, 1.0, %v862_v56  ;;  %v644_v55 = vsel %vm161_vm5, 1.0, %v862_v56 }
  0x8b   :  { %v182_v59 = vadd.f32 %v641_v44, %v142_v49  ;;  %v218_v60 = vadd.f32 %v645_v16, %v178_v40  ;;  %v183_v61 = vadd.f32 %v642_v46, %v143_v50  ;;  %v219_v62 = vadd.f32 %v646_v17, %v179_v41 }
  0x8c   :  { %v184_v0 = vadd.f32 %v643_v54, %v144_v57  ;;  %v220_v1 = vadd.f32 %v647_v42, %v180_v47  ;;  %v185_v2 = vadd.f32 %v644_v55, %v145_v58  ;;  %v221_v3 = vadd.f32 %v648_v43, %v181_v48 }
  0x90   :  { %v193_v63 = vpop.permute.xlu1 %192 }
  0x91   :  { %vm198_vm2 = vcmp.eq.s32.totalorder %v985_v45, %v193_v63  ;;  %vm199_vm3 = vcmp.eq.s32.totalorder %v1000_v51, %v193_v63  ;;  %vm200_vm6 = vcmp.eq.s32.totalorder %v1003_v52, %v193_v63  ;;  %vm201_vm7 = vcmp.eq.s32.totalorder %v1006_v53, %v193_v63  ;;  %v823_v52 = vld [vmem:[%s1129_s3 + $0x8] sm:$0xff]  ;;  %v822_v53 = vld [vmem:[%s1129_s3] sm:$0xff] }
  0x92   :  { %v649_v4 = vsel %vm198_vm2, 1.0, %v862_v56  ;;  %v650_v5 = vsel %vm199_vm3, 1.0, %v862_v56  ;;  %v651_v6 = vsel %vm200_vm6, 1.0, %v862_v56  ;;  %v652_v7 = vsel %vm201_vm7, 1.0, %v862_v56  ;;  %579 = vmatpush.bf16.msrb.mxu0 %v823_v52 }
  0x93   :  { %v222_v8 = vadd.f32 %v649_v4, %v182_v59  ;;  %v223_v9 = vadd.f32 %v650_v5, %v183_v61  ;;  %v224_v10 = vadd.f32 %v651_v6, %v184_v0  ;;  %v225_v11 = vadd.f32 %v652_v7, %v185_v2 }
  0x95   :  { %v226_v12 = vpack.c.bf16 %v222_v8, %v218_v60  ;;  %v227_v45 = vpack.c.bf16 %v223_v9, %v219_v62  ;;  %v228_v13 = vpack.c.bf16 %v224_v10, %v220_v1  ;;  %v229_v51 = vpack.c.bf16 %v225_v11, %v221_v3 }
  0x96   :  { %580 = vmatpush.bf16.msrb.mxu0 %v822_v53 }
  0x97   :  { %498 = vmatmul.bf16.vlgmr.msra.gmra.mxu0 %v226_v12  ;;  %512 = vmatmul.bf16.vlgmr.msra.gmra.mxu1 %v227_v45 }
  0x98   :  { %526 = vmatmul.bf16.vlgmr.msra.gmra.mxu2 %v228_v13  ;;  %540 = vmatmul.bf16.vlgmr.msra.gmra.mxu3 %v229_v51 }
 0x114   :  { %v499_v56 = vpop.f32.mrf.mxu0  ;;  %v513_v15 = vpop.f32.mrf.mxu1 }
 0x115   :  { %v500_v16 = vadd.f32 %v843_v14, %v499_v56 }
 0x117   :  { %v514_v20 = vadd.f32 %v513_v15, %v500_v16 }
 0x11b   :  { %v527_v17 = vpop.f32.mrf.mxu2  ;;  %v541_v18 = vpop.f32.mrf.mxu3 }
 0x11c   :  { %v501_v19 = vpop.f32.mrf.mxu0  ;;  %v528_v22 = vadd.f32 %v527_v17, %v514_v20  ;;  %v515_v23 = vpop.f32.mrf.mxu1 }
 0x11d   :  { %v502_v21 = vadd.f32 %v843_v14, %v501_v19 }
 0x11e   :  { %v542_v25 = vadd.f32 %v541_v18, %v528_v22 }
 0x11f   :  { %v516_v24 = vadd.f32 %v515_v23, %v502_v21 }
 0x120   :  { %845 = vtanh.f32 %v542_v25 }
 0x123   :  { %v529_v26 = vpop.f32.mrf.mxu2  ;;  %v543_v28 = vpop.f32.mrf.mxu3 }
 0x124   :  { %v530_v27 = vadd.f32 %v529_v26, %v516_v24 }
 0x126   :  { %v544_v29 = vadd.f32 %v543_v28, %v530_v27  ;;  %v846_v30 = vpop.eup %845 }
 0x128   :  { %847 = vtanh.f32 %v544_v29 }
 0x12e   :  { %v848_v31 = vpop.eup %847 }
 0x12f   :  { %v548_v32 = vpack.c.bf16 %v848_v31, %v846_v30 }
 0x131   :  { %789 = vmatmul.msk.bf16.vlgmr.msrb.gmra.mxu0 %vm569_vm8, %v548_v32 }
 0x1ae   :  { %v582_v34 = vpop.f32.mrf.mxu0 }
 0x1af   :  { %v583_v35 = vadd.f32 %v844_v33, %v582_v34 }
 0x1b1   :  { %587 = vmax.xlane.f32.xlu2 %v583_v35 }
 0x1b6   :  { %v584_v36 = vpop.f32.mrf.mxu0 }
 0x1b7   :  { %v585_v37 = vadd.f32 %v844_v33, %v584_v36 }
 0x1b9   :  { %589 = vmax.xlane.f32.xlu0 %v585_v37 }
 0x224   :  { %v588_v38 = vpop.xlane.xlu2 %587 }
 0x225   :  { %v591_v39 = vsub.f32 %v583_v35, %v588_v38 }
 0x227   :  { %v593_v40 = vmul.f32 1.442695, %v591_v39 }
 0x229   :  { %849 = vpow2.f32 %v593_v40 }
 0x22c   :  { %v590_v41 = vpop.xlane.xlu0 %589 }
 0x22d   :  { %v592_v42 = vsub.f32 %v585_v37, %v590_v41 }
 0x22f   :  { %v850_v43 = vpop.eup %849  ;;  %v595_v44 = vmul.f32 1.442695, %v592_v42 }
 0x230   :  { %597 = vadd.xlane.f32.xlu1 %v850_v43 }
 0x231   :  { %851 = vpow2.f32 %v595_v44 }
 0x237   :  { %v852_v46 = vpop.eup %851 }
 0x238   :  { %599 = vadd.xlane.f32.xlu2 %v852_v46 }
 0x2a3   :  { %v598_v47 = vpop.xlane.xlu1 %597 }
 0x2a4   :  { %853 = vrcp.f32 %v598_v47 }
 0x2aa   :  { %v854_v49 = vpop.eup %853 }
 0x2ab   :  { %v600_v48 = vpop.xlane.xlu2 %599  ;;  %v603_v54 = vmul.f32 %v854_v49, %v850_v43 }
 0x2ac   :  { %855 = vrcp.f32 %v600_v48 }
 0x2b2   :  { %v856_v50 = vpop.eup %855 }
 0x2b3   :  { %v604_v55 = vmul.f32 %v856_v50, %v852_v46 }
 0x2b5   :  { %v827_v57 = vpack.c.bf16 %v604_v55, %v603_v54 }
 0x2b7   :  { %828 = vst [vmem:[%s1130_s5] sm:$0xff] %v827_v57  }

</bundles_post_ra>
